<compile_context>
chip_gen: v5e
topology: v5e:2x2
jax: 0.10.0
libtpu: 0.0.40
codegen_flags: <defaults>
</compile_context>

<pallas_src>
import numpy as np

import jax
import jax.numpy as jnp
from jax.experimental import pallas as pl
from jax.experimental.pallas import tpu as pltpu


# ---------------- Kernel ----------------
def rope_kernel(x_ref, cs1_ref, cs2_ref, pe_ref, po_ref, o_ref):
    x = x_ref[...]                                  # (rows, Dh)
    # a = [x_even | x_even], b = [x_odd | x_odd] — exact gather via 0/1 matmul.
    a = jnp.dot(x, pe_ref[...],
                precision=jax.lax.Precision.HIGHEST,
                preferred_element_type=jnp.float32)
    b = jnp.dot(x, po_ref[...],
                precision=jax.lax.Precision.HIGHEST,
                preferred_element_type=jnp.float32)
    # cs1 = [cos | sin], cs2 = [-sin | cos]  (already expanded per row outside)
    o_ref[...] = a * cs1_ref[...] + b * cs2_ref[...]


# ---------------- Host-side helpers ----------------
def _perm_matrices(head_dim: int):
    """Pe: lane 2j -> {j, half+j};  Po: lane 2j+1 -> {j, half+j}."""
    half = head_dim // 2
    pe = np.zeros((head_dim, head_dim), np.float32)
    po = np.zeros((head_dim, head_dim), np.float32)
    for j in range(half):
        pe[2 * j, j] = 1.0
        pe[2 * j, half + j] = 1.0
        po[2 * j + 1, j] = 1.0
        po[2 * j + 1, half + j] = 1.0
    return jnp.asarray(pe), jnp.asarray(po)


def rope_forward(x, theta):
    """x: (B, H, S, Dh) float32, theta: (Dh//2,) float32 -> (B, H, S, Dh)."""
    B, H, S, Dh = x.shape
    T = B * H * S

    # Precompute angle tables once (tiny, independent of batch size).
    pos = jnp.arange(S, dtype=jnp.float32)[:, None]          # (S, 1)
    ang = pos * theta[None, :]                                # (S, Dh/2)
    cos = jnp.cos(ang)
    sin = jnp.sin(ang)
    cs1 = jnp.concatenate([cos, sin], axis=-1)                # (S, Dh)  -> scales [x1|x1]
    cs2 = jnp.concatenate([-sin, cos], axis=-1)               # (S, Dh)  -> scales [x2|x2]
    # Rows of the flattened x are ordered (b, h, s) with s fastest -> tile over B*H.
    cs1 = jnp.tile(cs1, (B * H, 1))                           # (T, Dh)
    cs2 = jnp.tile(cs2, (B * H, 1))                           # (T, Dh)

    pe, po = _perm_matrices(Dh)

    x2d = x.reshape(T, Dh)                                    # lane-dense token slab

    # Row blocking: split rows into 2 blocks when possible so v7x's two
    # TensorCores both get work; sublane rule needs row_blk % 8 == 0.
    if T % 16 == 0:
        row_blk = T // 2
    else:
        row_blk = T
    grid = (T // row_blk,)

    row_spec = pl.BlockSpec((row_blk, Dh), lambda i: (i, 0))
    perm_spec = pl.BlockSpec((Dh, Dh), lambda i: (0, 0))

    out = pl.pallas_call(
        rope_kernel,
        out_shape=jax.ShapeDtypeStruct((T, Dh), jnp.float32),
        grid=grid,
        in_specs=[row_spec, row_spec, row_spec, perm_spec, perm_spec],
        out_specs=row_spec,
        compiler_params=pltpu.CompilerParams(
            dimension_semantics=("parallel",)),
    )(x2d, cs1, cs2, pe, po)

    return out.reshape(B, H, S, Dh)


# ---------------- Pure-JAX reference (for verification only) ----------------
def rope_reference(x, theta):
    S = x.shape[2]
    pos = jnp.arange(S, dtype=jnp.float32)[:, None]
    ang = pos * theta[None, :]
    cos = jnp.cos(ang)[None, None]
    sin = jnp.sin(ang)[None, None]
    x1 = x[..., 0::2]
    x2 = x[..., 1::2]
    return jnp.concatenate([-x2 * sin + x1 * cos, x1 * sin + x2 * cos], axis=-1)


if __name__ == "__main__":
    key = jax.random.PRNGKey(0)
    B, H, S, Dh = 2, 5, 8, 64            # DeepSeekMoE config: n_heads=5, head_dim=64
    base = 10000.0

    x = jax.random.normal(key, (B, H, S, Dh), dtype=jnp.float32)
    theta = 1.0 / (base ** (jnp.arange(0, Dh, 2, dtype=jnp.float32) / Dh))

    fwd = jax.jit(rope_forward)
    out = fwd(x, theta)
    jax.block_until_ready(out)

    ref = rope_reference(x, theta)
    assert out.shape == (B, H, S, Dh), out.shape
    assert bool(jnp.all(jnp.isfinite(out)))
    assert bool(jnp.allclose(out, ref, atol=1e-5, rtol=1e-5))
    print("KERNEL_OK")
</pallas_src>

<mosaic_0001>
module attributes {stable_mosaic.version = 11 : i64} {
  func.func @rope_kernel(%arg0: i32, %arg1: memref<40x64xf32, #tpu.memory_space<vmem>>, %arg2: memref<40x64xf32, #tpu.memory_space<vmem>>, %arg3: memref<40x64xf32, #tpu.memory_space<vmem>>, %arg4: memref<64x64xf32, #tpu.memory_space<vmem>>, %arg5: memref<64x64xf32, #tpu.memory_space<vmem>>, %arg6: memref<40x64xf32, #tpu.memory_space<vmem>>) attributes {dimension_semantics = [#tpu.dimension_semantics<parallel>], iteration_bounds = array<i64: 2>, scalar_prefetch = 0 : i64, scratch_operands = 0 : i64, tpu.core_type = #tpu.core_type<tc>, window_params = [{transform_indices = @transform_0, window_bounds = array<i64: 40, 64>}, {transform_indices = @transform_1, window_bounds = array<i64: 40, 64>}, {transform_indices = @transform_2, window_bounds = array<i64: 40, 64>}, {pipeline_mode = #tpu.pipeline_mode<synchronous>, transform_indices = @transform_3, window_bounds = array<i64: 64, 64>}, {pipeline_mode = #tpu.pipeline_mode<synchronous>, transform_indices = @transform_4, window_bounds = array<i64: 64, 64>}, {transform_indices = @transform_5, window_bounds = array<i64: 40, 64>}]} {
    %c0 = arith.constant 0 : index
    %c0_0 = arith.constant 0 : index
    %0 = vector.load %arg1[%c0, %c0_0] : memref<40x64xf32, #tpu.memory_space<vmem>>, vector<40x64xf32>
    %c0_1 = arith.constant 0 : index
    %c0_2 = arith.constant 0 : index
    %1 = vector.load %arg4[%c0_1, %c0_2] : memref<64x64xf32, #tpu.memory_space<vmem>>, vector<64x64xf32>
    %cst = arith.constant dense<0.000000e+00> : vector<40x64xf32>
    %2 = tpu.matmul %0, %1, %cst {dimension_numbers = #tpu.dot_dimension_numbers<[1], [0], [0], [1], [0, 0, 1, 1], [], []>, precision = #tpu.contract_precision<fp32>} : vector<40x64xf32>, vector<64x64xf32>, vector<40x64xf32> -> vector<40x64xf32>
    %c0_3 = arith.constant 0 : index
    %c0_4 = arith.constant 0 : index
    %3 = vector.load %arg5[%c0_3, %c0_4] : memref<64x64xf32, #tpu.memory_space<vmem>>, vector<64x64xf32>
    %cst_5 = arith.constant dense<0.000000e+00> : vector<40x64xf32>
    %4 = tpu.matmul %0, %3, %cst_5 {dimension_numbers = #tpu.dot_dimension_numbers<[1], [0], [0], [1], [0, 0, 1, 1], [], []>, precision = #tpu.contract_precision<fp32>} : vector<40x64xf32>, vector<64x64xf32>, vector<40x64xf32> -> vector<40x64xf32>
    %c0_6 = arith.constant 0 : index
    %c0_7 = arith.constant 0 : index
    %5 = vector.load %arg2[%c0_6, %c0_7] : memref<40x64xf32, #tpu.memory_space<vmem>>, vector<40x64xf32>
    %6 = arith.mulf %2, %5 : vector<40x64xf32>
    %c0_8 = arith.constant 0 : index
    %c0_9 = arith.constant 0 : index
    %7 = vector.load %arg3[%c0_8, %c0_9] : memref<40x64xf32, #tpu.memory_space<vmem>>, vector<40x64xf32>
    %8 = arith.mulf %4, %7 : vector<40x64xf32>
    %9 = arith.addf %6, %8 : vector<40x64xf32>
    %c0_10 = arith.constant 0 : index
    %c0_11 = arith.constant 0 : index
    %10 = vector.load %arg6[%c0_10, %c0_11] : memref<40x64xf32, #tpu.memory_space<vmem>>, vector<40x64xf32>
    tpu.vector_store %arg6[%c0_10, %c0_11], %9 {strides = array<i32>} : memref<40x64xf32, #tpu.memory_space<vmem>>, vector<40x64xf32>,
    return
  }
  func.func @transform_0(%arg0: i32) -> (i32, i32) {
    %c0_i32 = arith.constant 0 : i32
    %c0_i32_0 = arith.constant 0 : i32
    return %arg0, %c0_i32 : i32, i32
  }
  func.func @transform_1(%arg0: i32) -> (i32, i32) {
    %c0_i32 = arith.constant 0 : i32
    %c0_i32_0 = arith.constant 0 : i32
    return %arg0, %c0_i32 : i32, i32
  }
  func.func @transform_2(%arg0: i32) -> (i32, i32) {
    %c0_i32 = arith.constant 0 : i32
    %c0_i32_0 = arith.constant 0 : i32
    return %arg0, %c0_i32 : i32, i32
  }
  func.func @transform_3(%arg0: i32) -> (i32, i32) {
    %c0_i32 = arith.constant 0 : i32
    %c0_i32_0 = arith.constant 0 : i32
    %c0_i32_1 = arith.constant 0 : i32
    return %c0_i32, %c0_i32_0 : i32, i32
  }
  func.func @transform_4(%arg0: i32) -> (i32, i32) {
    %c0_i32 = arith.constant 0 : i32
    %c0_i32_0 = arith.constant 0 : i32
    %c0_i32_1 = arith.constant 0 : i32
    return %c0_i32, %c0_i32_0 : i32, i32
  }
  func.func @transform_5(%arg0: i32) -> (i32, i32) {
    %c0_i32 = arith.constant 0 : i32
    %c0_i32_0 = arith.constant 0 : i32
    return %arg0, %c0_i32 : i32, i32
  }
}

</mosaic_0001>

<bundles_post_ra>
// kernel: rope_forward.1
= control target key start
LH: loop header
LB: loop body
LE: loop exit
PB: predicated region body
PF: predicated region fallthrough
CT: control target
= control target key end

     0   :  { %10 = vsyncpa [#allocation3], 0  ;;  %s1885_s0 = inlined_call_operand.vmem [shape: f32[80,64], index: 0, kind: input, shape index: {}]   ;;  %s1886_s1 = inlined_call_operand.vmem [shape: f32[80,64], index: 1, kind: input, shape index: {}]   ;;  %s1887_s2 = inlined_call_operand.vmem [shape: f32[80,64], index: 2, kind: input, shape index: {}]   ;;  %s1888_s3 = inlined_call_operand.vmem [shape: f32[64,64], index: 3, kind: input, shape index: {}]   ;;  %s1889_s4 = inlined_call_operand.vmem [shape: f32[64,64], index: 4, kind: input, shape index: {}]   ;;  %s1890_s5 = inlined_call_operand.hbm [shape: f32[80,64], index: 5, kind: output, shape index: {}]  }
   0x1   :  { %12 = vsyncpa [#allocation3 + $0x1], 0  ;;  %s1310_s18 = smov 0   ;;  %s1312_s19 = smov 0  }
   0x2   :  { %s1314_s20 = smov 0   ;;  %s1316_s21 = smov 0  }
   0x3 LB: > { %s1331_s22 = sadd.s32 4294967295, %s1276_s21   ;;  %s1161_s23 = sadd.s32 4294967294, %s1276_s21   ;;  %s1276_s21 = sphi %s1316_s21, %s1896_s21   ;;  %s1272_s20 = sphi %s1314_s20, %s1895_s20   ;;  %s1268_s19 = sphi %s1312_s19, %s1894_s19   ;;  %s1264_s18 = sphi %s1310_s18, %s1893_s18  }
   0x4   : > { %s1335_s24 = sadd.s32 1, %s1276_s21   ;;  %s145_s25 = sadd.s32 1, %s1272_s20 }
   0x5   : > { %s142_s26 = ssub.s32 %s1276_s21, %s1335_s24  ;;  %p155_p0 = scmp.ne.s32.totalorder %s1272_s20, %s1268_s19 }
   0x6   : > { %p143_p1 = scmp.eq.s32.totalorder %s142_s26, 0  ;;  %p156_p2 = scmp.eq.s32.totalorder %s1331_s22, 1 }
   0x7   : > { %p161_p3 = scmp.ne.s32.totalorder %s1268_s19, %s1264_s18  ;;  %p162_p4 = scmp.eq.s32.totalorder %s1161_s23, 1 }
   0x8   : > { %s1346_s27 = scalar_select %p143_p1, %s1272_s20, %s145_s25  }
   0x9   : > { %p1348_p5 = por %p156_p2, %p155_p0  ;;  %p1352_p6 = por %p162_p4, %p161_p3 }
   0xa   : > { %p1164_p7 = scmp.ge.s32.totalorder %s1276_s21, 1  ;;  %p213_p8 = scmp.lt.s32.totalorder %s1276_s21, 3 }
   0xc   : > { %p214_p9 = pnand %p1164_p7, %p213_p8 }
   0xd   : > { %s251_s11 = smul.u32 (!%p214_p9), 5, %s1331_s22  ;;  %s248_s14 = sand.u32 (!%p214_p9), 1, %s1268_s19  }
   0xe   : > { %217 = sbr.rel (%p214_p9) target bundleno = 297 (0x129), region = 40  ;;  %s1060_s9 = scalar_lea.sflag (!%p214_p9), [#allocation3], %s248_s14 }
   0xf   : > { %p252_p10 = scmp.lt.s32.totalorder (!%p214_p9), %s251_s11, 9  ;;  %s1172_s23 = smul.u32 (!%p214_p9), 40, %s248_s14 }
  0x10   : > { %s1171_s25 = smul.u32 (!%p214_p9), 40, %s1331_s22  ;;  %s1234_s15 = scalar_lea.hbm (!%p214_p9), %s1890_s5, 80 }
  0x12   : > { %s1071_s6 = scalar_lea.hbm (!%p214_p9), %s1890_s5, %s1171_s25 }
  0x13   : > { %v282_v0 = vld [vmem:[%s1888_s3 + $0x38] sm:$0xff]  ;;  %v281_v1 = vld [vmem:[%s1888_s3 + $0x30] sm:$0xff]  ;;  %v280_v2 = vld [vmem:[%s1888_s3 + $0x28] sm:$0xff]  ;;  %vm283_vm0 = vcmask 523264   ;;  %s1898_s11 = smov (!%p252_p10, %s251_s11), 9  ;;  %s1074_s7 = sshll.u32 %s1071_s6, 4  ;;  %s1075_s7 = int_to_ptr.hbm [resolvable:$true] %s1074_s7 }
  0x14   : > { %v1368_v3 = vand.u32 4294901760, %v282_v0  ;;  %v1370_v4 = vand.u32 4294901760, %v281_v1  ;;  %v1372_v5 = vand.u32 4294901760, %v280_v2  ;;  %v279_v6 = vld [vmem:[%s1888_s3 + $0x20] sm:$0xff]  ;;  %v278_v7 = vld [vmem:[%s1888_s3 + $0x18] sm:$0xff]  ;;  %v277_v8 = vld [vmem:[%s1888_s3 + $0x10] sm:$0xff] }
  0x15   : > { %v1383_v9 = vand.u32 4294901760, %v279_v6  ;;  %v1385_v10 = vand.u32 4294901760, %v278_v7  ;;  %v1387_v11 = vand.u32 4294901760, %v277_v8  ;;  %v276_v12 = vld [vmem:[%s1888_s3 + $0x8] sm:$0xff]  ;;  %v275_v13 = vld [vmem:[%s1888_s3] sm:$0xff]  ;;  %v667_v22 = vld [vmem:[%s1889_s4 + $0x38] sm:$0xff] }
  0x16   : > { %308 = vmatpush.msra.mxu0 %v1368_v3  ;;  %v1397_v14 = vsub.f32 %v282_v0, %v1368_v3  ;;  %508 = vmatpush.msra.mxu3 %v1368_v3  ;;  %v1401_v15 = vsub.f32 %v281_v1, %v1370_v4  ;;  %v1404_v16 = vsub.f32 %v280_v2, %v1372_v5  ;;  %v1406_v17 = vand.u32 4294901760, %v276_v12  ;;  %s1433_s8 = sshll.u32 %s1898_s11, 3  ;;  %v666_v37 = vld [vmem:[%s1889_s4 + $0x30] sm:$0xff]  ;;  %v665_v38 = vld [vmem:[%s1889_s4 + $0x28] sm:$0xff]  ;;  %v664_v56 = vld [vmem:[%s1889_s4 + $0x20] sm:$0xff]  ;;  %s1228_s10 = sshra.s32 %s1075_s7, 4  ;;  %s1229_s10 = int_to_ptr.hbm [resolvable:$true] %s1228_s10 }
  0x17   : > { %v1409_v18 = vsub.f32 %v279_v6, %v1383_v9  ;;  %v1412_v19 = vsub.f32 %v278_v7, %v1385_v10  ;;  %v1415_v20 = vsub.f32 %v277_v8, %v1387_v11  ;;  %v1417_v21 = vand.u32 4294901760, %v275_v13  ;;  %s1454_s11 = scalar_lea.vmem %s1885_s0, %s1433_s8  ;;  %v663_v1 = vld [vmem:[%s1889_s4 + $0x18] sm:$0xff]  ;;  %s1808_s13 = scalar_lea.vmem %s1886_s1, %s1433_s8 }
  0x18   : > { %310 = vmatpush.msra.mxu0 %v1370_v4  ;;  %451 = vmatpush.msra.mxu2 %v1397_v14  ;;  %v374_v23 = vand.u32 4294901760, %v1397_v14  ;;  %v380_v24 = vand.u32 4294901760, %v1401_v15  ;;  %v386_v25 = vand.u32 4294901760, %v1404_v16  ;;  %v1428_v26 = vsub.f32 %v276_v12, %v1406_v17  ;;  %v270_v36 = vld [vmem:[%s1454_s11] sm:$0xff]  ;;  %v271_v43 = vld [vmem:[%s1454_s11 + $0x8] sm:$0xff]  ;;  %v272_v44 = vld [vmem:[%s1454_s11 + $0x10] sm:$0xff]  ;;  %s1815_s17 = scalar_lea.vmem %s1887_s2, %s1433_s8  ;;  %p1235_p0 = scmp.lt.s32.totalorder %s1229_s10, %s1890_s5 }
  0x19   : > { %510 = vmatpush.msra.mxu3 %v1370_v4  ;;  %v392_v27 = vand.u32 4294901760, %v1409_v18  ;;  %v398_v28 = vand.u32 4294901760, %v1412_v19  ;;  %v404_v29 = vand.u32 4294901760, %v1415_v20  ;;  %v1437_v30 = vsub.f32 %v275_v13, %v1417_v21  ;;  %s1822_s8 = scalar_lea.vmem [#allocation2], %s1172_s23 }
  0x1a   : > { %312 = vmatpush.msra.mxu0 %v1372_v5  ;;  %454 = vmatpush.msra.mxu2 %v1401_v15  ;;  %v375_v31 = vsub.f32 %v1397_v14, %v374_v23  ;;  %v381_v32 = vsub.f32 %v1401_v15, %v380_v24  ;;  %v387_v33 = vsub.f32 %v1404_v16, %v386_v25  ;;  %v1456_v34 = vand.u32 4294901760, %v667_v22  ;;  %s1072_s22 = sshll.u32 %s1822_s8, 4  ;;  %s1073_s22 = int_to_ptr.vmem [resolvable:$true] %s1072_s22 }
  0x1b   : > { %512 = vmatpush.msra.mxu3 %v1372_v5  ;;  %v393_v35 = vsub.f32 %v1409_v18, %v392_v27  ;;  %v285_v41 = vsel %vm283_vm0, %v270_v36, 0  ;;  %v410_v42 = vand.u32 4294901760, %v1428_v26  ;;  %v399_v45 = vsub.f32 %v1412_v19, %v398_v28 }
  0x1c   : > { %314 = vmatpush.msra.mxu0 %v1383_v9  ;;  %v376_v39 = vand.u32 4294901760, %v375_v31  ;;  %457 = vmatpush.msra.mxu2 %v1404_v16  ;;  %v382_v40 = vand.u32 4294901760, %v381_v32  ;;  %v1479_v46 = vand.u32 4294901760, %v285_v41  ;;  %v1484_v47 = vsub.f32 %v1415_v20, %v404_v29 }
  0x1d   : > { %514 = vmatpush.msra.mxu3 %v1383_v9  ;;  %v388_v48 = vand.u32 4294901760, %v387_v33  ;;  %v1488_v49 = vsub.f32 %v667_v22, %v1456_v34  ;;  %v416_v50 = vand.u32 4294901760, %v1437_v30  ;;  %v1491_v51 = vand.u32 4294901760, %v666_v37 }
  0x1e   : > { %377 = vmatpush.msra.mxu1 %v376_v39  ;;  %316 = vmatpush.msra.mxu0 %v1385_v10  ;;  %v1496_v52 = vsub.f32 %v285_v41, %v1479_v46  ;;  %v288_v53 = vsel %vm283_vm0, %v271_v43, 0  ;;  %v1499_v54 = vand.u32 4294901760, %v665_v38  ;;  %v291_v55 = vsel %vm283_vm0, %v272_v44, 0  ;;  %v273_v41 = vld [vmem:[%s1454_s11 + $0x18] sm:$0xff]  ;;  %v662_v43 = vld [vmem:[%s1889_s4 + $0x10] sm:$0xff] }
  0x1f   : > { %460 = vmatpush.msra.mxu2 %v1409_v18  ;;  %516 = vmatpush.msra.mxu3 %v1385_v10  ;;  %v394_v57 = vand.u32 4294901760, %v393_v35  ;;  %v411_v58 = vsub.f32 %v1428_v26, %v410_v42  ;;  %v743_v59 = vand.u32 4294901760, %v1488_v49  ;;  %v1510_v60 = vand.u32 4294901760, %v288_v53 }
  0x20   : > { %383 = vmatpush.msra.mxu1 %v382_v40  ;;  %318 = vmatpush.msra.mxu0 %v1387_v11  ;;  %v1515_v61 = vand.u32 4294901760, %v1496_v52  ;;  %v1518_v62 = vsub.f32 %v666_v37, %v1491_v51  ;;  %v1521_v63 = vsub.f32 %v665_v38, %v1499_v54  ;;  %v1523_v0 = vand.u32 4294901760, %v291_v55 }
  0x21   : > { %463 = vmatpush.msra.mxu2 %v1412_v19  ;;  %518 = vmatpush.msra.mxu3 %v1387_v11  ;;  %v400_v2 = vand.u32 4294901760, %v399_v45  ;;  %v744_v6 = vsub.f32 %v1488_v49, %v743_v59  ;;  %v1533_v7 = vsub.f32 %v288_v53, %v1510_v60  ;;  %v1535_v8 = vand.u32 4294901760, %v664_v56  ;;  %v661_v53 = vld [vmem:[%s1889_s4 + $0x8] sm:$0xff] }
  0x22   : > { %389 = vmatpush.msra.mxu1 %v388_v48  ;;  %320 = vmatpush.msra.mxu0 %v1406_v17  ;;  %v326_v12 = vsub.f32 %v1496_v52, %v1515_v61  ;;  %v417_v13 = vsub.f32 %v1437_v30, %v416_v50  ;;  %v749_v22 = vand.u32 4294901760, %v1518_v62  ;;  %v755_v31 = vand.u32 4294901760, %v1521_v63 }
  0x23   : > { %466 = vmatpush.msra.mxu2 %v1415_v20  ;;  %520 = vmatpush.msra.mxu3 %v1406_v17  ;;  %v406_v32 = vand.u32 4294901760, %v1484_v47  ;;  %v1549_v33 = vand.u32 4294901760, %v1533_v7  ;;  %v1552_v35 = vsub.f32 %v664_v56, %v1535_v8  ;;  %v1554_v36 = vand.u32 4294901760, %v663_v1 }
  0x24   : > { %395 = vmatpush.msra.mxu1 %v394_v57  ;;  %322 = vmatpush.msra.mxu0 %v1417_v21  ;;  %v1557_v37 = vand.u32 4294901760, %v326_v12  ;;  %v412_v38 = vand.u32 4294901760, %v411_v58  ;;  %v750_v39 = vsub.f32 %v1518_v62, %v749_v22  ;;  %v1564_v40 = vsub.f32 %v291_v55, %v1523_v0 }
  0x25   : > { %469 = vmatpush.msra.mxu2 %v1428_v26  ;;  %522 = vmatpush.msra.mxu3 %v1417_v21  ;;  %v745_v44 = vand.u32 4294901760, %v744_v6  ;;  %v756_v45 = vsub.f32 %v1521_v63, %v755_v31  ;;  %v761_v47 = vand.u32 4294901760, %v1552_v35  ;;  %v1576_v48 = vsub.f32 %v663_v1, %v1554_v36  ;;  %v660_v6 = vld [vmem:[%s1889_s4] sm:$0xff] }
  0x26   : > { %401 = vmatpush.msra.mxu1 %v400_v2  ;;  %526 = vmatmul.f32.vlgmr.msra.gmra.mxu3 %v1515_v61  ;;  %v418_v55 = vand.u32 4294901760, %v417_v13  ;;  %v334_v56 = vsub.f32 %v1533_v7, %v1549_v33  ;;  %v751_v57 = vand.u32 4294901760, %v750_v39  ;;  %v294_v58 = vsel %vm283_vm0, %v273_v41, 0 }
  0x27   : > { %328 = vmatmul.f32.vlgmr.msra.gmra.mxu0 %v1557_v37  ;;  %472 = vmatpush.msra.mxu2 %v1437_v30  ;;  %v767_v1 = vand.u32 4294901760, %v1576_v48  ;;  %v1588_v2 = vand.u32 4294901760, %v662_v43  ;;  %v1596_v12 = vand.u32 4294901760, %v661_v53  ;;  %v757_v13 = vand.u32 4294901760, %v756_v45 }
  0x28   : > { %407 = vmatpush.msra.mxu1 %v406_v32  ;;  %475 = vmatmul.f32.vlgmr.msra.gmra.mxu2 %v1496_v52  ;;  %v1599_v32 = vand.u32 4294901760, %v1564_v40  ;;  %v762_v39 = vsub.f32 %v1552_v35, %v761_v47  ;;  %v1608_v14 = vand.u32 4294901760, %v334_v56 }
  0x29   : > { %677 = vmatpush.msrb.mxu2 %v1456_v34  ;;  %565 = vmatpush.msrb.mxu0 %v374_v23  ;;  %v1605_v41 = vsub.f32 %v662_v43, %v1588_v2  ;;  %v1612_v23 = vand.u32 4294901760, %v294_v58  ;;  %v768_v43 = vsub.f32 %v1576_v48, %v767_v1 }
  0x2a   : > { %413 = vmatpush.msra.mxu1 %v412_v38  ;;  %746 = vmatpush.msrb.mxu3 %v745_v44  ;;  %v1615_v38 = vsub.f32 %v661_v53, %v1596_v12  ;;  %v1617_v44 = vand.u32 4294901760, %v660_v6  ;;  %v763_v53 = vand.u32 4294901760, %v762_v39 }
  0x2b   : > { %679 = vmatpush.msrb.mxu2 %v1491_v51  ;;  %569 = vmatpush.msrb.mxu0 %v380_v24  ;;  %v773_v15 = vand.u32 4294901760, %v1605_v41  ;;  %v274_v24 = vld [vmem:[%s1454_s11 + $0x20] sm:$0xff]  ;;  %v1635_v56 = vsub.f32 %v294_v58, %v1612_v23  ;;  %s1230_s11 = scalar_lea.hbm %s1229_s10, 40 }
  0x2c   : > { %419 = vmatpush.msra.mxu1 %v418_v55  ;;  %752 = vmatpush.msrb.mxu3 %v751_v57  ;;  %v1627_v45 = vsub.f32 %v660_v6, %v1617_v44  ;;  %v342_v55 = vsub.f32 %v1564_v40, %v1599_v32  ;;  %v779_v57 = vand.u32 4294901760, %v1615_v38  ;;  %v769_v6 = vand.u32 4294901760, %v768_v43  ;;  %p1231_p11 = scmp.ne.s32.totalorder %s1229_s10, %s1230_s11  ;;  %p1236_p1 = scmp.lt.s32.totalorder %s1234_s15, %s1230_s11 }
  0x2d   : > { %421 = vmatmul.f32.vlgmr.msra.gmra.mxu1 %v1479_v46  ;;  %681 = vmatpush.msrb.mxu2 %v1499_v54 }
  0x2e   : > { %624 = vmatpush.msrb.mxu1 %v1368_v3  ;;  %532 = vmatmul.f32.gmra.mxu3 %v1549_v33  ;;  %v297_v3 = vsel %vm283_vm0, %v274_v24, 0  ;;  %v785_v58 = vand.u32 4294901760, %v1627_v45  ;;  %v1649_v39 = vand.u32 4294901760, %v342_v55  ;;  %p1232_p12 = pnand %p1231_p11, %p1348_p5  ;;  %p1237_p2 = por %p1236_p1, %p1235_p0 }
  0x2f   : > { %336 = vmatmul.f32.gmra.mxu0 %v1608_v14  ;;  %758 = vmatpush.msrb.mxu3 %v757_v13  ;;  %v774_v13 = vsub.f32 %v1605_v41, %v773_v15  ;;  %v1657_v16 = vand.u32 4294901760, %v297_v3 }
  0x30   : > { %480 = vmatmul.f32.gmra.mxu2 %v1533_v7  ;;  %626 = vmatpush.msrb.mxu1 %v1370_v4  ;;  %v1655_v4 = vand.u32 4294901760, %v1635_v56  ;;  %v786_v18 = vsub.f32 %v1627_v45, %v785_v58  ;;  %p1233_p13 = pneg %p1232_p12 }
  0x31   : > { %573 = vmatpush.msrb.mxu0 %v386_v25  ;;  %683 = vmatpush.msrb.mxu2 %v1535_v8  ;;  %v780_v25 = vsub.f32 %v1615_v38, %v779_v57 }
  0x32   : > { %628 = vmatpush.msrb.mxu1 %v1372_v5  ;;  %764 = vmatpush.msrb.mxu3 %v763_v53  ;;  %v775_v5 = vand.u32 4294901760, %v774_v13  ;;  %p1238_p3 = pnand %p1237_p2, %p1233_p13 }
  0x33   : > { %577 = vmatpush.msrb.mxu0 %v392_v27  ;;  %685 = vmatpush.msrb.mxu2 %v1554_v36  ;;  %v1676_v27 = vsub.f32 %v297_v3, %v1657_v16  ;;  %v781_v19 = vand.u32 4294901760, %v780_v25 }
  0x34   : > { %630 = vmatpush.msrb.mxu1 %v1383_v9  ;;  %770 = vmatpush.msrb.mxu3 %v769_v6  ;;  %v350_v9 = vsub.f32 %v1635_v56, %v1655_v4 }
  0x35   : > { %425 = vmatmul.f32.gmra.mxu1 %v1510_v60  ;;  %581 = vmatpush.msrb.mxu0 %v398_v28  ;;  %v1688_v43 = vand.u32 4294901760, %v1676_v27 }
  0x36   : > { %538 = vmatmul.f32.gmra.mxu3 %v1599_v32  ;;  %632 = vmatpush.msrb.mxu1 %v1385_v10  ;;  %v787_v10 = vand.u32 4294901760, %v786_v18  ;;  %v1685_v28 = vand.u32 4294901760, %v350_v9 }
  0x37   : > { %344 = vmatmul.f32.gmra.mxu0 %v1649_v39  ;;  %687 = vmatpush.msrb.mxu2 %v1588_v2 }
  0x38   : > { %485 = vmatmul.f32.gmra.mxu2 %v1564_v40  ;;  %585 = vmatpush.msrb.mxu0 %v404_v29 }
  0x39   : > { %776 = vmatpush.msrb.mxu3 %v775_v5  ;;  %634 = vmatpush.msrb.mxu1 %v1387_v11  ;;  %v358_v11 = vsub.f32 %v1676_v27, %v1688_v43 }
  0x3a   : > { %689 = vmatpush.msrb.mxu2 %v1596_v12  ;;  %589 = vmatpush.msrb.mxu0 %v410_v42 }
  0x3b   : > { %782 = vmatpush.msrb.mxu3 %v781_v19  ;;  %636 = vmatpush.msrb.mxu1 %v1406_v17  ;;  %v359_v17 = vand.u32 4294901760, %v358_v11 }
  0x3c   : > { %691 = vmatpush.msrb.mxu2 %v1617_v44  ;;  %593 = vmatpush.msrb.mxu0 %v416_v50 }
  0x3d   : > { %429 = vmatmul.f32.gmra.mxu1 %v1523_v0  ;;  %788 = vmatpush.msrb.mxu3 %v787_v10 }
  0x3e   : > { %544 = vmatmul.f32.gmra.mxu3 %v1655_v4  ;;  %638 = vmatpush.msrb.mxu1 %v1417_v21 }
  0x3f   : > { %352 = vmatmul.f32.gmra.mxu0 %v1685_v28  ;;  %934 = vmatpush.msra.mxu2 %v743_v59 }
  0x40   : > { %490 = vmatmul.f32.gmra.mxu2 %v1635_v56  ;;  %820 = vmatpush.msra.mxu0 %v1488_v49 }
  0x41   : > { %993 = vmatpush.msra.mxu3 %v1456_v34  ;;  %877 = vmatpush.msra.mxu1 %v1456_v34 }
  0x42   : > { %938 = vmatpush.msra.mxu2 %v749_v22  ;;  %823 = vmatpush.msra.mxu0 %v1518_v62 }
  0x43   : > { %995 = vmatpush.msra.mxu3 %v1491_v51  ;;  %879 = vmatpush.msra.mxu1 %v1491_v51 }
  0x44   : > { %942 = vmatpush.msra.mxu2 %v755_v31  ;;  %826 = vmatpush.msra.mxu0 %v1521_v63 }
  0x45   : > { %433 = vmatmul.f32.gmra.mxu1 %v1612_v23  ;;  %997 = vmatpush.msra.mxu3 %v1499_v54 }
  0x46   : > { %550 = vmatmul.f32.gmra.mxu3 %v1688_v43  ;;  %881 = vmatpush.msra.mxu1 %v1499_v54 }
  0x47   : > { %360 = vmatmul.f32.gmra.mxu0 %v359_v17  ;;  %946 = vmatpush.msra.mxu2 %v761_v47 }
  0x48   : > { %495 = vmatmul.f32.gmra.mxu2 %v1676_v27  ;;  %829 = vmatpush.msra.mxu0 %v1552_v35 }
  0x49   : > { %999 = vmatpush.msra.mxu3 %v1535_v8  ;;  %883 = vmatpush.msra.mxu1 %v1535_v8 }
  0x4a   : > { %950 = vmatpush.msra.mxu2 %v767_v1  ;;  %832 = vmatpush.msra.mxu0 %v1576_v48 }
  0x4b   : > { %1001 = vmatpush.msra.mxu3 %v1554_v36  ;;  %885 = vmatpush.msra.mxu1 %v1554_v36 }
  0x4c   : > { %954 = vmatpush.msra.mxu2 %v773_v15  ;;  %835 = vmatpush.msra.mxu0 %v1605_v41 }
  0x4d   : > { %437 = vmatmul.f32.gmra.mxu1 %v1657_v16  ;;  %1003 = vmatpush.msra.mxu3 %v1588_v2 }
  0x4e   : > { %790 = vmatmul.f32.vlgmr.msrb.gmra.mxu3 %v1479_v46  ;;  %887 = vmatpush.msra.mxu1 %v1588_v2 }
  0x4f   : > { %595 = vmatmul.f32.vlgmr.msrb.gmra.mxu0 %v1479_v46  ;;  %958 = vmatpush.msra.mxu2 %v779_v57 }
  0x50   : > { %697 = vmatmul.f32.vlgmr.msrb.gmra.mxu2 %v1557_v37  ;;  %838 = vmatpush.msra.mxu0 %v1615_v38 }
  0x51   : > { %1005 = vmatpush.msra.mxu3 %v1596_v12  ;;  %889 = vmatpush.msra.mxu1 %v1596_v12 }
  0x52   : > { %962 = vmatpush.msra.mxu2 %v785_v58  ;;  %841 = vmatpush.msra.mxu0 %v1627_v45 }
  0x53   : > { %1007 = vmatpush.msra.mxu3 %v1617_v44  ;;  %891 = vmatpush.msra.mxu1 %v1617_v44 }
  0x55   : > { %640 = vmatmul.f32.vlgmr.msrb.gmra.mxu1 %v1479_v46 }
  0x56   : > { %794 = vmatmul.f32.gmra.mxu3 %v1510_v60 }
  0x57   : > { %599 = vmatmul.f32.gmra.mxu0 %v1510_v60 }
  0x58   : > { %705 = vmatmul.f32.gmra.mxu2 %v1608_v14 }
  0x5d   : > { %644 = vmatmul.f32.gmra.mxu1 %v1510_v60 }
  0x5e   : > { %798 = vmatmul.f32.gmra.mxu3 %v1523_v0 }
  0x5f   : > { %603 = vmatmul.f32.gmra.mxu0 %v1523_v0 }
  0x60   : > { %713 = vmatmul.f32.gmra.mxu2 %v1649_v39 }
  0x65   : > { %648 = vmatmul.f32.gmra.mxu1 %v1523_v0 }
  0x66   : > { %802 = vmatmul.f32.gmra.mxu3 %v1612_v23 }
  0x67   : > { %607 = vmatmul.f32.gmra.mxu0 %v1612_v23 }
  0x68   : > { %721 = vmatmul.f32.gmra.mxu2 %v1685_v28 }
  0x6d   : > { %652 = vmatmul.f32.gmra.mxu1 %v1612_v23 }
  0x6e   : > { %806 = vmatmul.f32.gmra.mxu3 %v1657_v16 }
  0x6f   : > { %611 = vmatmul.f32.gmra.mxu0 %v1657_v16 }
  0x70   : > { %729 = vmatmul.f32.gmra.mxu2 %v359_v17 }
  0x75   : > { %656 = vmatmul.f32.gmra.mxu1 %v1657_v16 }
  0x76   : > { %1009 = vmatmul.f32.vlgmr.msra.gmra.mxu3 %v1479_v46 }
  0x77   : > { %844 = vmatmul.f32.vlgmr.msra.gmra.mxu0 %v1496_v52 }
  0x78   : > { %964 = vmatmul.f32.vlgmr.msra.gmra.mxu2 %v1479_v46 }
  0x7d   : > { %895 = vmatmul.f32.vlgmr.msra.gmra.mxu1 %v1515_v61 }
  0x7e   : > { %1013 = vmatmul.f32.gmra.mxu3 %v1510_v60 }
  0x7f   : > { %849 = vmatmul.f32.gmra.mxu0 %v1533_v7 }
  0x80   : > { %968 = vmatmul.f32.gmra.mxu2 %v1510_v60 }
  0x85   : > { %901 = vmatmul.f32.gmra.mxu1 %v1549_v33 }
  0x86   : > { %1017 = vmatmul.f32.gmra.mxu3 %v1523_v0 }
  0x87   : > { %854 = vmatmul.f32.gmra.mxu0 %v1564_v40 }
  0x88   : > { %972 = vmatmul.f32.gmra.mxu2 %v1523_v0 }
  0x8d   : > { %907 = vmatmul.f32.gmra.mxu1 %v1599_v32 }
  0x8e   : > { %1021 = vmatmul.f32.gmra.mxu3 %v1612_v23 }
  0x8f   : > { %859 = vmatmul.f32.gmra.mxu0 %v1635_v56 }
  0x90   : > { %976 = vmatmul.f32.gmra.mxu2 %v1612_v23 }
  0x95   : > { %913 = vmatmul.f32.gmra.mxu1 %v1655_v4 }
  0x96   : > { %1025 = vmatmul.f32.gmra.mxu3 %v1657_v16 }
  0x97   : > { %864 = vmatmul.f32.gmra.mxu0 %v1676_v27 }
  0x98   : > { %980 = vmatmul.f32.gmra.mxu2 %v1657_v16 }
  0x9d   : > { %919 = vmatmul.f32.gmra.mxu1 %v1688_v43 }
  0xa4   : > { %v329_v20 = vpop.f32.mrf.mxu0 }
  0xa9   : > { %v527_v21 = vpop.f32.mrf.mxu3 }
  0xaa   : > { %v422_v26 = vpop.f32.mrf.mxu1 }
  0xab   : > { %v423_v29 = vadd.f32 %v422_v26, %v329_v20  ;;  %v476_v30 = vpop.f32.mrf.mxu2  ;;  %v1029_v26 = vld [vmem:[%s1808_s13] sm:$0xff] }
  0xac   : > { %v337_v34 = vpop.f32.mrf.mxu0 }
  0xad   : > { %v477_v42 = vadd.f32 %v476_v30, %v423_v29  ;;  %v1039_v29 = vld [vmem:[%s1815_s17] sm:$0xff] }
  0xaf   : > { %v528_v46 = vadd.f32 %v527_v21, %v477_v42 }
  0xb1   : > { %v533_v49 = vpop.f32.mrf.mxu3 }
  0xb2   : > { %v426_v50 = vpop.f32.mrf.mxu1 }
  0xb3   : > { %v427_v51 = vadd.f32 %v426_v50, %v337_v34  ;;  %v481_v52 = vpop.f32.mrf.mxu2 }
  0xb4   : > { %v345_v54 = vpop.f32.mrf.mxu0 }
  0xb5   : > { %v482_v59 = vadd.f32 %v481_v52, %v427_v51 }
  0xb7   : > { %v1784_v60 = vadd.f32 %v533_v49, %v482_v59 }
  0xb9   : > { %v539_v61 = vpop.f32.mrf.mxu3 }
  0xba   : > { %v430_v62 = vpop.f32.mrf.mxu1 }
  0xbb   : > { %v431_v63 = vadd.f32 %v430_v62, %v345_v54  ;;  %v486_v0 = vpop.f32.mrf.mxu2 }
  0xbc   : > { %v353_v7 = vpop.f32.mrf.mxu0 }
  0xbd   : > { %v487_v8 = vadd.f32 %v486_v0, %v431_v63 }
  0xbf   : > { %v1786_v22 = vadd.f32 %v539_v61, %v487_v8  ;;  %v1040_v8 = vld [vmem:[%s1815_s17 + $0x8] sm:$0xff] }
  0xc1   : > { %v545_v31 = vpop.f32.mrf.mxu3 }
  0xc2   : > { %v434_v33 = vpop.f32.mrf.mxu1 }
  0xc3   : > { %v435_v35 = vadd.f32 %v434_v33, %v353_v7  ;;  %v491_v36 = vpop.f32.mrf.mxu2  ;;  %v1030_v7 = vld [vmem:[%s1808_s13 + $0x8] sm:$0xff] }
  0xc4   : > { %v361_v37 = vpop.f32.mrf.mxu0 }
  0xc5   : > { %v492_v40 = vadd.f32 %v491_v36, %v435_v35 }
  0xc7   : > { %v1788_v47 = vadd.f32 %v545_v31, %v492_v40 }
  0xc9   : > { %v551_v48 = vpop.f32.mrf.mxu3 }
  0xca   : > { %v438_v1 = vpop.f32.mrf.mxu1 }
  0xcb   : > { %v439_v2 = vadd.f32 %v438_v1, %v361_v37  ;;  %v496_v12 = vpop.f32.mrf.mxu2 }
  0xcc   : > { %v596_v32 = vpop.f32.mrf.mxu0 }
  0xcd   : > { %v497_v41 = vadd.f32 %v496_v12, %v439_v2  ;;  %v597_v28 = vadd.f32 %v596_v32, %v528_v46 }
  0xcf   : > { %v1790_v14 = vadd.f32 %v551_v48, %v497_v41 }
  0xd1   : > { %v791_v23 = vpop.f32.mrf.mxu3 }
  0xd2   : > { %v641_v38 = vpop.f32.mrf.mxu1 }
  0xd3   : > { %v698_v44 = vpop.f32.mrf.mxu2  ;;  %v642_v20 = vadd.f32 %v641_v38, %v597_v28  ;;  %v1031_v38 = vld [vmem:[%s1808_s13 + $0x10] sm:$0xff] }
  0xd4   : > { %v600_v15 = vpop.f32.mrf.mxu0  ;;  %v792_v9 = vadd.f32 %v791_v23, %v698_v44  ;;  %v1041_v44 = vld [vmem:[%s1815_s17 + $0x10] sm:$0xff] }
  0xd5   : > { %v1034_v42 = vmul.f32 %v1029_v26, %v642_v20  ;;  %v601_v52 = vadd.f32 %v600_v15, %v1784_v60 }
  0xd9   : > { %v795_v24 = vpop.f32.mrf.mxu3 }
  0xda   : > { %v645_v45 = vpop.f32.mrf.mxu1 }
  0xdb   : > { %v706_v53 = vpop.f32.mrf.mxu2  ;;  %v646_v63 = vadd.f32 %v645_v45, %v601_v52 }
  0xdc   : > { %v604_v55 = vpop.f32.mrf.mxu0  ;;  %v796_v30 = vadd.f32 %v795_v24, %v706_v53 }
  0xdd   : > { %v1035_v35 = vmul.f32 %v1030_v7, %v646_v63  ;;  %v605_v48 = vadd.f32 %v604_v55, %v1786_v22 }
  0xe1   : > { %v799_v56 = vpop.f32.mrf.mxu3 }
  0xe2   : > { %v649_v57 = vpop.f32.mrf.mxu1 }
  0xe3   : > { %v714_v6 = vpop.f32.mrf.mxu2  ;;  %v650_v41 = vadd.f32 %v649_v57, %v605_v48 }
  0xe4   : > { %v1792_v3 = vpop.f32.mrf.mxu0  ;;  %v800_v31 = vadd.f32 %v799_v56, %v714_v6 }
  0xe5   : > { %v1036_v45 = vmul.f32 %v1031_v38, %v650_v41  ;;  %v609_v6 = vadd.f32 %v1792_v3, %v1788_v47 }
  0xe9   : > { %v803_v13 = vpop.f32.mrf.mxu3 }
  0xea   : > { %v1794_v58 = vpop.f32.mrf.mxu1 }
  0xeb   : > { %v722_v39 = vpop.f32.mrf.mxu2 }
  0xec   : > { %v1796_v4 = vpop.f32.mrf.mxu0  ;;  %v804_v15 = vadd.f32 %v803_v13, %v722_v39  ;;  %v1032_v13 = vld [vmem:[%s1808_s13 + $0x18] sm:$0xff] }
  0xf1   : > { %v1798_v16 = vpop.f32.mrf.mxu3 }
  0xf2   : > { %v1800_v25 = vpop.f32.mrf.mxu1 }
  0xf3   : > { %v1802_v5 = vpop.f32.mrf.mxu2 }
  0xf4   : > { %v845_v18 = vpop.f32.mrf.mxu0  ;;  %v808_v28 = vadd.f32 %v1798_v16, %v1802_v5 }
  0xf5   : > { %v846_v27 = vadd.f32 %v845_v18, %v792_v9 }
  0xf9   : > { %v1010_v19 = vpop.f32.mrf.mxu3 }
  0xfa   : > { %v896_v10 = vpop.f32.mrf.mxu1 }
  0xfb   : > { %v897_v43 = vadd.f32 %v896_v10, %v846_v27  ;;  %v965_v11 = vpop.f32.mrf.mxu2  ;;  %v654_v27 = vadd.f32 %v1794_v58, %v609_v6  ;;  %v1042_v10 = vld [vmem:[%s1815_s17 + $0x18] sm:$0xff]  ;;  %v613_v58 = vadd.f32 %v1796_v4, %v1790_v14 }
  0xfc   : > { %v850_v17 = vpop.f32.mrf.mxu0 }
  0xfd   : > { %v966_v21 = vadd.f32 %v965_v11, %v897_v43  ;;  %v851_v46 = vadd.f32 %v850_v17, %v796_v30  ;;  %v1037_v47 = vmul.f32 %v1032_v13, %v654_v27  ;;  %v658_v16 = vadd.f32 %v1800_v25, %v613_v58  ;;  %v1033_v30 = vld [vmem:[%s1808_s13 + $0x20] sm:$0xff] }
  0xff   : > { %v1011_v34 = vadd.f32 %v1010_v19, %v966_v21  ;;  %v1038_v14 = vmul.f32 %v1033_v30, %v658_v16 }
 0x101   : > { %v1044_v49 = vmul.f32 %v1039_v29, %v1011_v34  ;;  %v1014_v50 = vpop.f32.mrf.mxu3  ;;  %v1043_v34 = vld [vmem:[%s1815_s17 + $0x20] sm:$0xff] }
 0x102   : > { %v902_v51 = vpop.f32.mrf.mxu1 }
 0x103   : > { %v1049_v54 = vadd.f32 %v1044_v49, %v1034_v42  ;;  %v903_v59 = vadd.f32 %v902_v51, %v851_v46  ;;  %v969_v61 = vpop.f32.mrf.mxu2 }
 0x104   : > { %v855_v62 = vpop.f32.mrf.mxu0 }
 0x105   : > { %1054 = vst.msk [vmem:[%s1822_s8] sm:$0xff] %vm283_vm0, %v1049_v54  ;;  %v970_v0 = vadd.f32 %v969_v61, %v903_v59  ;;  %v856_v60 = vadd.f32 %v855_v62, %v800_v31 }
 0x107   : > { %v1015_v33 = vadd.f32 %v1014_v50, %v970_v0 }
 0x109   : > { %v1045_v36 = vmul.f32 %v1040_v8, %v1015_v33  ;;  %v1018_v37 = vpop.f32.mrf.mxu3 }
 0x10a   : > { %v908_v40 = vpop.f32.mrf.mxu1 }
 0x10b   : > { %v1050_v1 = vadd.f32 %v1045_v36, %v1035_v35  ;;  %v909_v2 = vadd.f32 %v908_v40, %v856_v60  ;;  %v973_v12 = vpop.f32.mrf.mxu2 }
 0x10c   : > { %v860_v32 = vpop.f32.mrf.mxu0 }
 0x10d   : > { %1055 = vst.msk [vmem:[%s1822_s8 + $0x8] sm:$0xff] %vm283_vm0, %v1050_v1  ;;  %v974_v23 = vadd.f32 %v973_v12, %v909_v2  ;;  %v861_v53 = vadd.f32 %v860_v32, %v804_v15 }
 0x10f   : > { %v1019_v24 = vadd.f32 %v1018_v37, %v974_v23 }
 0x111   : > { %v1046_v56 = vmul.f32 %v1041_v44, %v1019_v24  ;;  %v1022_v55 = vpop.f32.mrf.mxu3 }
 0x112   : > { %v914_v22 = vpop.f32.mrf.mxu1 }
 0x113   : > { %v1051_v57 = vadd.f32 %v1046_v56, %v1036_v45  ;;  %v915_v18 = vadd.f32 %v914_v22, %v861_v53  ;;  %v977_v9 = vpop.f32.mrf.mxu2 }
 0x114   : > { %v865_v39 = vpop.f32.mrf.mxu0 }
 0x115   : > { %1056 = vst.msk [vmem:[%s1822_s8 + $0x10] sm:$0xff] %vm283_vm0, %v1051_v57  ;;  %v978_v19 = vadd.f32 %v977_v9, %v915_v18  ;;  %v866_v3 = vadd.f32 %v865_v39, %v808_v28 }
 0x117   : > { %v1023_v43 = vadd.f32 %v1022_v55, %v978_v19 }
 0x119   : > { %v1047_v11 = vmul.f32 %v1042_v10, %v1023_v43  ;;  %v1026_v29 = vpop.f32.mrf.mxu3 }
 0x11a   : > { %v920_v17 = vpop.f32.mrf.mxu1 }
 0x11b   : > { %v1052_v20 = vadd.f32 %v1047_v11, %v1037_v47  ;;  %v921_v21 = vadd.f32 %v920_v17, %v866_v3  ;;  %v981_v26 = vpop.f32.mrf.mxu2 }
 0x11d   : > { %1057 = vst.msk [vmem:[%s1822_s8 + $0x18] sm:$0xff] %vm283_vm0, %v1052_v20  ;;  %v982_v5 = vadd.f32 %v981_v26, %v921_v21 }
 0x11f   : > { %v1027_v42 = vadd.f32 %v1026_v29, %v982_v5 }
 0x121   : > { %v1048_v4 = vmul.f32 %v1043_v34, %v1027_v42 }
 0x123   : > { %v1053_v46 = vadd.f32 %v1048_v4, %v1038_v14 }
 0x125   : > { %1058 = vst.msk [vmem:[%s1822_s8 + $0x20] sm:$0xff] %vm283_vm0, %v1053_v46 }
 0x126   : > { %1241 = shalt.err (!%p1238_p3)
}
 0x127   : > { %s1278_s14 = smov 128   ;;  %s1279_s23 = smov 8  }
 0x128   : > { %1173 = dma.vmem_to_hbm [thread:$0]  (%p1348_p5), %s1073_s22, 640, %s1075_s7, %s1060_s9, %s1278_s14, %s1278_s14, %s1279_s23  }
 0x129 PF: > { %p1179_p4 = scmp.ge.s32.totalorder %s1276_s21, 2  ;;  %s1089_s8 = sand.u32 1, %s1264_s18  }
 0x12a   : > { %s1090_s25 = scalar_lea.sflag [#allocation3], %s1089_s8 }
 0x12b   : > { %p1176_p7 = pnand %p1179_p4, %p1352_p6 }
 0x12d   : > { %p1177_p8 = pneg %p1176_p7 }
 0x12f   : > { %1259 = dma.done.wait (%p1177_p8), %s1090_s25, 640  }
 0x130   : > { %1261 = vsyncadd (%p1177_p8), %s1090_s25, 4294966656  ;;  %p15_p9 = scmp.ge.s32.totalorder %s1335_s24, 4   ;;  %s1893_s18 = smov %s1268_s19 }
 0x131   : > { %s1894_s19 = smov %s1272_s20  ;;  %s1895_s20 = smov %s1346_s27 }
 0x132   : > { %s1896_s21 = smov %s1335_s24  ;;  %17 = sbr.rel (!%p15_p9) target bundleno = 3 (0x3), region = 81 }
 0x137   :  { %1096 = vsyncpa [#allocation3], 1 }
 0x138   :  { %1098 = vsyncpa [#allocation3 + $0x1], 1 }

</bundles_post_ra>
